<compile_context>
chip_gen: v6e
topology: v6e:2x2x1
jax: 0.10.0
libtpu: 0.0.40
codegen_flags: <defaults>
</compile_context>

<pallas_src>
import functools

import jax
import jax.numpy as jnp
from jax import lax
from jax.experimental import pallas as pl
from jax.experimental.pallas import tpu as pltpu


_EPS = 1e-12      # matches torch.nn.functional.normalize default eps
_NEG_INF = -1e30  # finite "minus infinity" for masked (padded) key columns


def _l2_normalize(x):
    norm = jnp.sqrt(jnp.sum(x * x, axis=-1, keepdims=True))
    return x / jnp.maximum(norm, _EPS)


def _round_up(x, m):
    return ((x + m - 1) // m) * m


def _infonce_kernel(qn_ref, kn_ref, *rest, inv_temperature, needs_mask):
    # Static arg-unpacking: the padding-bias input only exists when n is not
    # tile aligned, so tile-aligned batches pay zero masking cost.
    if needs_mask:
        bias_ref, out_ref, l_scr = rest
    else:
        out_ref, l_scr = rest

    kv = pl.program_id(1)
    nk = pl.num_programs(1)

    @pl.when(kv == 0)
    def _init():
        l_scr[...] = jnp.zeros_like(l_scr)

    # Unit-scale cosine logits: bf16 MXU operands, f32 accumulation.
    # Contract the last axes of both operands so no transposed key copy is
    # materialized.
    logits = lax.dot_general(
        qn_ref[...], kn_ref[...],
        dimension_numbers=(((1,), (1,)), ((), ())),
        preferred_element_type=jnp.float32)

    # Fixed softmax max m = 1/T (cosine bound): exp((logits - 1) / T) <= ~1.
    s = (logits - 1.0) * inv_temperature
    if needs_mask:
        s = s + bias_ref[...]  # (1, tk) broadcast: 0 for valid cols, -1e30 padded

    l_scr[...] += jnp.sum(jnp.exp(s), axis=-1, keepdims=True)

    # Finalize: per-row logsumexp of logits/T (the diagonal subtraction and the
    # mean over the true N rows happen in the wrapper).
    @pl.when(kv == nk - 1)
    def _finalize():
        out_ref[...] = jnp.log(l_scr[...]) + inv_temperature


def info_nce_pallas(query, positive_key, temperature=0.1,
                    block_q=256, block_k=512):
    assert query.ndim == 2 and positive_key.ndim == 2
    assert query.shape == positive_key.shape
    n, d = query.shape
    inv_t = float(1.0 / temperature)

    # --- hoisted O(N*D) prep in plain JAX (f32) -----------------------------
    qn = _l2_normalize(query.astype(jnp.float32))
    pn = _l2_normalize(positive_key.astype(jnp.float32))
    # Positive (diagonal) logit at unit scale, full f32 precision.
    diag = jnp.sum(qn * pn, axis=-1)  # (n,)

    # --- tiling --------------------------------------------------------------
    d_pad = _round_up(d, 128)                                  # lane-dense contraction
    tk = _round_up(min(block_k, _round_up(n, 128)), 128)       # key tile
    n_pad = _round_up(n, tk)
    tq = block_q if (block_q > 0 and n_pad % block_q == 0) else 128
    needs_mask = (n_pad != n)

    # bf16 operands; zero padding (rows and feature cols) after normalization
    # changes neither norms nor dots.
    qn_p = jnp.pad(qn, ((0, n_pad - n), (0, d_pad - d))).astype(jnp.bfloat16)
    kn_p = jnp.pad(pn, ((0, n_pad - n), (0, d_pad - d))).astype(jnp.bfloat16)

    in_specs = [
        pl.BlockSpec((tq, d_pad), lambda qi, kv: (qi, 0)),  # query rows (bf16)
        pl.BlockSpec((tk, d_pad), lambda qi, kv: (kv, 0)),  # key tiles  (bf16)
    ]
    args = [qn_p, kn_p]
    if needs_mask:
        bias = jnp.where(jnp.arange(n_pad) < n, 0.0, _NEG_INF)
        bias = bias.astype(jnp.float32)[None, :]             # (1, n_pad)
        in_specs.append(pl.BlockSpec((1, tk), lambda qi, kv: (0, kv)))
        args.append(bias)

    grid = (n_pad // tq, n_pad // tk)
    kernel = functools.partial(
        _infonce_kernel, inv_temperature=inv_t, needs_mask=needs_mask)

    # VMEM budget: double-buffered bf16 q/key tiles + f32 out/bias + scratch.
    vmem_need = (2 * tq * d_pad * 2 + 2 * tk * d_pad * 2
                 + 2 * tq * 4 + (2 * tk * 4 if needs_mask else 0) + tq * 4)
    vmem_limit = int(min(max(32 * 1024 * 1024, 2 * vmem_need),
                         48 * 1024 * 1024))  # stays under v7x 64 MiB physical

    lse = pl.pallas_call(
        kernel,
        out_shape=jax.ShapeDtypeStruct((n_pad, 1), jnp.float32),
        grid_spec=pltpu.PrefetchScalarGridSpec(
            num_scalar_prefetch=0,
            grid=grid,
            in_specs=in_specs,
            out_specs=pl.BlockSpec((tq, 1), lambda qi, kv: (qi, 0)),
            scratch_shapes=[
                pltpu.VMEM((tq, 1), jnp.float32),   # running sum of exp
            ],
        ),
        compiler_params=pltpu.CompilerParams(
            dimension_semantics=("parallel", "arbitrary"),
            vmem_limit_bytes=vmem_limit),
    )(*args)

    # per-row cross-entropy; reduction='mean' over the true N rows only.
    per_row = lse[:n, 0] - diag * inv_t
    return jnp.mean(per_row)


def _info_nce_ref(query, positive_key, temperature=0.1):
    # pure-JAX f32 reference for sanity checking
    qn = query / jnp.maximum(
        jnp.linalg.norm(query, axis=-1, keepdims=True), _EPS)
    pn = positive_key / jnp.maximum(
        jnp.linalg.norm(positive_key, axis=-1, keepdims=True), _EPS)
    logits = (qn @ pn.T) / temperature
    labels = jnp.arange(query.shape[0])
    logp = jax.nn.log_softmax(logits, axis=-1)
    return -jnp.mean(logp[jnp.arange(query.shape[0]), labels])


if __name__ == "__main__":
    key = jax.random.PRNGKey(0)
    k_q, k_p = jax.random.split(key)
    N, D = 8, 32
    query = jax.random.normal(k_q, (N, D), dtype=jnp.float32)
    positive_key = jax.random.normal(k_p, (N, D), dtype=jnp.float32)

    loss = info_nce_pallas(query, positive_key, temperature=0.1)
    jax.block_until_ready(loss)

    ref = _info_nce_ref(query, positive_key, temperature=0.1)
    # bf16 MXU operands with f32 accumulation -> ~1e-2 tolerance on the loss.
    assert jnp.allclose(loss, ref, rtol=2e-2, atol=2e-2), (loss, ref)

    print("KERNEL_OK")
</pallas_src>

<mosaic_0001>
module attributes {stable_mosaic.version = 11 : i64} {
  func.func @_infonce_kernel(%arg0: i32, %arg1: i32, %arg2: memref<128x128xbf16, #tpu.memory_space<vmem>>, %arg3: memref<128x128xbf16, #tpu.memory_space<vmem>>, %arg4: memref<1x128xf32, #tpu.memory_space<vmem>>, %arg5: memref<128x1xf32, #tpu.memory_space<vmem>>, %arg6: memref<128x1xf32, #tpu.memory_space<vmem>>) attributes {dimension_semantics = [#tpu.dimension_semantics<parallel>, #tpu.dimension_semantics<arbitrary>], iteration_bounds = array<i64: 1, 1>, scalar_prefetch = 0 : i64, scratch_operands = 1 : i64, tpu.core_type = #tpu.core_type<tc>, window_params = [{transform_indices = @transform_0, window_bounds = array<i64: 128, 128>}, {transform_indices = @transform_1, window_bounds = array<i64: 128, 128>}, {transform_indices = @transform_2, window_bounds = array<i64: 1, 128>}, {transform_indices = @transform_3, window_bounds = array<i64: 128, 1>}]} {
    %c0_i32 = arith.constant 0 : i32
    %0 = arith.cmpi eq, %arg1, %c0_i32 : i32
    %1 = arith.extui %0 : i1 to i32
    %c0_i32_0 = arith.constant 0 : i32
    %2 = arith.cmpi ne, %1, %c0_i32_0 : i32
    scf.if %2 {
      %cst_15 = arith.constant 0.000000e+00 : f32
      %22 = vector.broadcast %cst_15 : f32 to vector<128x1xf32>
      %c0_16 = arith.constant 0 : index
      %c0_17 = arith.constant 0 : index
      %23 = vector.load %arg6[%c0_16, %c0_17] : memref<128x1xf32, #tpu.memory_space<vmem>>, vector<128x1xf32>
      tpu.vector_store %arg6[%c0_16, %c0_17], %22 {strides = array<i32>} : memref<128x1xf32, #tpu.memory_space<vmem>>, vector<128x1xf32>,
    } else {
    }
    %c0 = arith.constant 0 : index
    %c0_1 = arith.constant 0 : index
    %3 = vector.load %arg2[%c0, %c0_1] : memref<128x128xbf16, #tpu.memory_space<vmem>>, vector<128x128xbf16>
    %c0_2 = arith.constant 0 : index
    %c0_3 = arith.constant 0 : index
    %4 = vector.load %arg3[%c0_2, %c0_3] : memref<128x128xbf16, #tpu.memory_space<vmem>>, vector<128x128xbf16>
    %cst = arith.constant dense<0.000000e+00> : vector<128x128xf32>
    %5 = tpu.matmul %3, %4, %cst {dimension_numbers = #tpu.dot_dimension_numbers<[1], [1], [0], [0], [0, 0, 1, 0], [], []>} : vector<128x128xbf16>, vector<128x128xbf16>, vector<128x128xf32> -> vector<128x128xf32>
    %cst_4 = arith.constant 1.000000e+00 : f32
    %6 = vector.broadcast %cst_4 : f32 to vector<128x128xf32>
    %7 = arith.subf %5, %6 : vector<128x128xf32>
    %cst_5 = arith.constant 1.000000e+01 : f32
    %8 = vector.broadcast %cst_5 : f32 to vector<128x128xf32>
    %9 = arith.mulf %7, %8 : vector<128x128xf32>
    %c0_6 = arith.constant 0 : index
    %c0_7 = arith.constant 0 : index
    %10 = vector.load %arg4[%c0_6, %c0_7] : memref<1x128xf32, #tpu.memory_space<vmem>>, vector<1x128xf32>
    %11 = vector.broadcast %10 : vector<1x128xf32> to vector<128x128xf32>
    %12 = arith.addf %9, %11 : vector<128x128xf32>
    %c0_8 = arith.constant 0 : index
    %c0_9 = arith.constant 0 : index
    %13 = vector.load %arg6[%c0_8, %c0_9] : memref<128x1xf32, #tpu.memory_space<vmem>>, vector<128x1xf32>
    %14 = math.exp %12 : vector<128x128xf32>
    %cst_10 = arith.constant dense<0.000000e+00> : vector<128xf32>
    %15 = vector.multi_reduction <add>, %14, %cst_10 [1] : vector<128x128xf32> to vector<128xf32>
    %16 = vector.shape_cast %15 : vector<128xf32> to vector<128x1xf32>
    %17 = arith.addf %13, %16 : vector<128x1xf32>
    %c0_11 = arith.constant 0 : index
    %c0_12 = arith.constant 0 : index
    %18 = vector.load %arg6[%c0_11, %c0_12] : memref<128x1xf32, #tpu.memory_space<vmem>>, vector<128x1xf32>
    tpu.vector_store %arg6[%c0_11, %c0_12], %17 {strides = array<i32>} : memref<128x1xf32, #tpu.memory_space<vmem>>, vector<128x1xf32>,
    %c0_i32_13 = arith.constant 0 : i32
    %19 = arith.cmpi eq, %arg1, %c0_i32_13 : i32
    %20 = arith.extui %19 : i1 to i32
    %c0_i32_14 = arith.constant 0 : i32
    %21 = arith.cmpi ne, %20, %c0_i32_14 : i32
    scf.if %21 {
      %c0_15 = arith.constant 0 : index
      %c0_16 = arith.constant 0 : index
      %22 = vector.load %arg6[%c0_15, %c0_16] : memref<128x1xf32, #tpu.memory_space<vmem>>, vector<128x1xf32>
      %23 = math.log %22 : vector<128x1xf32>
      %cst_17 = arith.constant 1.000000e+01 : f32
      %24 = vector.broadcast %cst_17 : f32 to vector<128x1xf32>
      %25 = arith.addf %23, %24 : vector<128x1xf32>
      %c0_18 = arith.constant 0 : index
      %c0_19 = arith.constant 0 : index
      %26 = vector.load %arg5[%c0_18, %c0_19] : memref<128x1xf32, #tpu.memory_space<vmem>>, vector<128x1xf32>
      tpu.vector_store %arg5[%c0_18, %c0_19], %25 {strides = array<i32>} : memref<128x1xf32, #tpu.memory_space<vmem>>, vector<128x1xf32>,
    } else {
    }
    return
  }
  func.func @transform_0(%arg0: i32, %arg1: i32) -> (i32, i32) {
    %c0_i32 = arith.constant 0 : i32
    %c0_i32_0 = arith.constant 0 : i32
    return %arg0, %c0_i32 : i32, i32
  }
  func.func @transform_1(%arg0: i32, %arg1: i32) -> (i32, i32) {
    %c0_i32 = arith.constant 0 : i32
    %c0_i32_0 = arith.constant 0 : i32
    return %arg1, %c0_i32 : i32, i32
  }
  func.func @transform_2(%arg0: i32, %arg1: i32) -> (i32, i32) {
    %c0_i32 = arith.constant 0 : i32
    %c0_i32_0 = arith.constant 0 : i32
    return %c0_i32, %arg1 : i32, i32
  }
  func.func @transform_3(%arg0: i32, %arg1: i32) -> (i32, i32) {
    %c0_i32 = arith.constant 0 : i32
    %c0_i32_0 = arith.constant 0 : i32
    return %arg0, %c0_i32 : i32, i32
  }
}

</mosaic_0001>

<bundles_post_ra>
// kernel: tpu_custom_call.1
= control target key start
LH: loop header
LB: loop body
LE: loop exit
PB: predicated region body
PF: predicated region fallthrough
CT: control target
= control target key end

     0   :  { %8 = vsyncpa [#allocation4], 0  ;;  %s920_s0 = inlined_call_operand.hbm [shape: bf16[128,128], index: 0, kind: input, shape index: {}]   ;;  %s921_s1 = inlined_call_operand.hbm [shape: bf16[128,128], index: 1, kind: input, shape index: {}]   ;;  %s922_s2 = inlined_call_operand.vmem [shape: f32[1,128], index: 2, kind: input, shape index: {}]   ;;  %s923_s3 = inlined_call_operand.vmem [shape: f32[128,1], index: 3, kind: output, shape index: {}]  }
   0x1   :  { %9 = vsyncpa [#allocation6], 0  ;;  %s772_s12 = smov [#allocation3]  }
   0x2   :  { %s15_s13 = sshll.u32 %s772_s12, 4  ;;  %s16_s13 = int_to_ptr.vmem [resolvable:$true] %s15_s13 }
   0x3   :  { %s736_s14 = scalar_lea.vmem %s16_s13, 1024  ;;  %p741_p1 = scmp.lt.s32.totalorder %s16_s13, %s16_s13 }
   0x4   :  { %p737_p0 = scmp.ne.s32.totalorder %s16_s13, %s736_s14  ;;  %p742_p2 = scmp.lt.s32.totalorder %s736_s14, %s736_s14 }
   0x6   :  { %p743_p3 = por %p742_p2, %p741_p1 }
   0x8   :  { %p744_p4 = pnand %p743_p3, %p737_p0 }
   0xa   :  { %747 = shalt.err (!%p744_p4)
}
   0xb   :  { %s773_s15 = smov 64   ;;  %s774_s16 = smov 4  }
   0xc   :  { %21 = dma.hbm_to_vmem [thread:$0]  %s920_s0, 1024, %s16_s13, [#allocation4], %s773_s15, %s773_s15, %s774_s16  }
   0xd   :  { %s775_s19 = smov [#allocation5]  }
   0xe   :  { %s27_s20 = sshll.u32 %s775_s19, 4  ;;  %s28_s20 = int_to_ptr.vmem [resolvable:$true] %s27_s20 }
   0xf   :  { %s756_s21 = scalar_lea.vmem %s28_s20, 1024  ;;  %p761_p6 = scmp.lt.s32.totalorder %s28_s20, %s28_s20 }
  0x10   :  { %p757_p5 = scmp.ne.s32.totalorder %s28_s20, %s756_s21  ;;  %p762_p7 = scmp.lt.s32.totalorder %s756_s21, %s756_s21 }
  0x12   :  { %p763_p8 = por %p762_p7, %p761_p6 }
  0x14   :  { %p764_p9 = pnand %p763_p8, %p757_p5 }
  0x16   :  { %767 = shalt.err (!%p764_p9)
}
  0x17   :  { %33 = dma.hbm_to_vmem [thread:$0]  %s921_s1, 1024, %s28_s20, [#allocation6], %s773_s15, %s773_s15, %s774_s16  }
  0x18   :  { %768 = dma.done.wait [#allocation4], 1024  }
  0x19   :  { %769 = vsyncadd [#allocation4], 4294966272 }
  0x1a   :  { %770 = dma.done.wait [#allocation6], 1024  }
  0x1b   :  { %771 = vsyncadd [#allocation6], 4294966272  ;;  %v648_v0 = vld [vmem:[#allocation5 + $0x38] sm:$0xff]   ;;  %v649_v1 = vld [vmem:[#allocation5 + $0x30] sm:$0xff]   ;;  %vm47_vm0 = vcmask 7168   ;;  %v776_v16 = vmov 0.0  }
  0x1c   :  { %595 = vmatprep.subr.bf16.mxu0 %v648_v0  ;;  %627 = vmatprep.subr.bf16.mxu1 %v648_v0  ;;  %v650_v2 = vld [vmem:[#allocation5 + $0x28] sm:$0xff]   ;;  %v656_v3 = vld [vmem:[#allocation3] sm:$0xff]   ;;  %v652_v6 = vld [vmem:[#allocation5 + $0x18] sm:$0xff]   ;;  %58 = vst.msk [vmem:[#allocation2 + $0x50] sm:$0xff] %vm47_vm0, %v776_v16 }
  0x1d   :  { %596 = vmatpush3.bf16.xpose.msra.mxu0 %v648_v0  ;;  %635 = vmatpush3.bf16.xpose.msra.mxu1 %v648_v0  ;;  %v657_v4 = vld [vmem:[#allocation3 + $0x20] sm:$0xff]   ;;  %v653_v7 = vld [vmem:[#allocation5 + $0x10] sm:$0xff]   ;;  %v654_v8 = vld [vmem:[#allocation5 + $0x8] sm:$0xff]   ;;  %48 = vst.msk [vmem:[#allocation2] sm:$0xff] %vm47_vm0, %v776_v16 }
  0x1e   :  { %597 = vmatprep.subr.bf16.mxu0 %v649_v1  ;;  %628 = vmatprep.subr.bf16.mxu1 %v649_v1  ;;  %v651_v5 = vld [vmem:[#allocation5 + $0x20] sm:$0xff]   ;;  %v658_v10 = vld [vmem:[#allocation3 + $0x8] sm:$0xff]   ;;  %v660_v12 = vld [vmem:[#allocation3 + $0x10] sm:$0xff]   ;;  %49 = vst.msk [vmem:[#allocation2 + $0x8] sm:$0xff] %vm47_vm0, %v776_v16 }
  0x1f   :  { %611 = vmatprep.mubr.bf16.mxu0 %v656_v3  ;;  %619 = vmatprep.mubr.bf16.mxu1 %v657_v4  ;;  %v655_v9 = vld [vmem:[#allocation5] sm:$0xff]   ;;  %v659_v11 = vld [vmem:[#allocation3 + $0x28] sm:$0xff]   ;;  %v662_v13 = vld [vmem:[#allocation3 + $0x30] sm:$0xff]   ;;  %50 = vst.msk [vmem:[#allocation2 + $0x10] sm:$0xff] %vm47_vm0, %v776_v16 }
  0x20   :  { %v661_v14 = vld [vmem:[#allocation3 + $0x18] sm:$0xff]   ;;  %51 = vst.msk [vmem:[#allocation2 + $0x18] sm:$0xff] %vm47_vm0, %v776_v16  ;;  %52 = vst.msk [vmem:[#allocation2 + $0x20] sm:$0xff] %vm47_vm0, %v776_v16  ;;  %v822_v30 = vld [vmem:[%s922_s2] ss:$0 sm:$0xff] }
  0x21   :  { %v663_v15 = vld [vmem:[#allocation3 + $0x38] sm:$0xff]   ;;  %53 = vst.msk [vmem:[#allocation2 + $0x28] sm:$0xff] %vm47_vm0, %v776_v16  ;;  %54 = vst.msk [vmem:[#allocation2 + $0x30] sm:$0xff] %vm47_vm0, %v776_v16 }
  0x22   :  { %55 = vst.msk [vmem:[#allocation2 + $0x38] sm:$0xff] %vm47_vm0, %v776_v16  ;;  %56 = vst.msk [vmem:[#allocation2 + $0x40] sm:$0xff] %vm47_vm0, %v776_v16 }
  0x23   :  { %57 = vst.msk [vmem:[#allocation2 + $0x48] sm:$0xff] %vm47_vm0, %v776_v16  ;;  %59 = vst.msk [vmem:[#allocation2 + $0x58] sm:$0xff] %vm47_vm0, %v776_v16 }
  0x24   :  { %60 = vst.msk [vmem:[#allocation2 + $0x60] sm:$0xff] %vm47_vm0, %v776_v16  ;;  %61 = vst.msk [vmem:[#allocation2 + $0x68] sm:$0xff] %vm47_vm0, %v776_v16 }
  0x25   :  { %598 = vmatpush3.bf16.xpose.msra.mxu0 %v649_v1  ;;  %636 = vmatpush3.bf16.xpose.msra.mxu1 %v649_v1  ;;  %62 = vst.msk [vmem:[#allocation2 + $0x70] sm:$0xff] %vm47_vm0, %v776_v16  ;;  %63 = vst.msk [vmem:[#allocation2 + $0x78] sm:$0xff] %vm47_vm0, %v776_v16 }
  0x26   :  { %599 = vmatprep.subr.bf16.mxu0 %v650_v2  ;;  %629 = vmatprep.subr.bf16.mxu1 %v650_v2 }
  0x2d   :  { %600 = vmatpush3.bf16.xpose.msra.mxu0 %v650_v2  ;;  %637 = vmatpush3.bf16.xpose.msra.mxu1 %v650_v2 }
  0x2e   :  { %601 = vmatprep.subr.bf16.mxu0 %v651_v5  ;;  %630 = vmatprep.subr.bf16.mxu1 %v651_v5 }
  0x35   :  { %602 = vmatpush3.bf16.xpose.msra.mxu0 %v651_v5  ;;  %638 = vmatpush3.bf16.xpose.msra.mxu1 %v651_v5 }
  0x36   :  { %603 = vmatprep.subr.bf16.mxu0 %v652_v6  ;;  %631 = vmatprep.subr.bf16.mxu1 %v652_v6 }
  0x3d   :  { %604 = vmatpush3.bf16.xpose.msra.mxu0 %v652_v6  ;;  %639 = vmatpush3.bf16.xpose.msra.mxu1 %v652_v6 }
  0x3e   :  { %605 = vmatprep.subr.bf16.mxu0 %v653_v7  ;;  %632 = vmatprep.subr.bf16.mxu1 %v653_v7 }
  0x45   :  { %606 = vmatpush3.bf16.xpose.msra.mxu0 %v653_v7  ;;  %640 = vmatpush3.bf16.xpose.msra.mxu1 %v653_v7 }
  0x46   :  { %607 = vmatprep.subr.bf16.mxu0 %v654_v8  ;;  %633 = vmatprep.subr.bf16.mxu1 %v654_v8 }
  0x4d   :  { %608 = vmatpush3.bf16.xpose.msra.mxu0 %v654_v8  ;;  %641 = vmatpush3.bf16.xpose.msra.mxu1 %v654_v8 }
  0x4e   :  { %609 = vmatprep.subr.bf16.mxu0 %v655_v9  ;;  %634 = vmatprep.subr.bf16.mxu1 %v655_v9 }
  0x55   :  { %610 = vmatpush3.bf16.xpose.msra.mxu0 %v655_v9  ;;  %642 = vmatpush3.bf16.xpose.msra.mxu1 %v655_v9 }
  0x5c   :  { %612 = vmatmul.mubr.bf16.vlgmr.msra.gmra.mxu0 %v658_v10  ;;  %620 = vmatmul.mubr.bf16.vlgmr.msra.gmra.mxu1 %v659_v11 }
  0x5d   :  { %615 = vmatprep.mubr.bf16.mxu0 %v660_v12  ;;  %623 = vmatprep.mubr.bf16.mxu1 %v662_v13 }
  0x64   :  { %616 = vmatmul.mubr.bf16.gmra.mxu0 %v661_v14  ;;  %624 = vmatmul.mubr.bf16.gmra.mxu1 %v663_v15 }
 0x11c   :  { %v613_v17 = vpop.f32.mrf.mxu0  ;;  %v621_v19 = vpop.f32.mrf.mxu1 }
 0x11d   :  { %v572_v21 = vadd.f32 -1.0, %v621_v19  ;;  %v564_v23 = vadd.f32 -1.0, %v613_v17 }
 0x11e   :  { %v226_v18 = vpop.f32.mrf.mxu0  ;;  %v258_v22 = vpop.f32.mrf.mxu1 }
 0x11f   :  { %v315_v26 = vmul.f32 10.0, %v572_v21  ;;  %v562_v27 = vadd.f32 -1.0, %v226_v18  ;;  %v307_v29 = vmul.f32 10.0, %v564_v23  ;;  %v570_v32 = vadd.f32 -1.0, %v258_v22 }
 0x120   :  { %v614_v20 = vpop.f32.mrf.mxu0  ;;  %v622_v28 = vpop.f32.mrf.mxu1 }
 0x121   :  { %v565_v25 = vadd.f32 -1.0, %v614_v20  ;;  %v338_v34 = vadd.f32 %v822_v30, %v315_v26  ;;  %v305_v35 = vmul.f32 10.0, %v562_v27  ;;  %v330_v37 = vadd.f32 %v822_v30, %v307_v29 }
 0x122   :  { %v229_v24 = vpop.f32.mrf.mxu0  ;;  %v261_v36 = vpop.f32.mrf.mxu1  ;;  %v573_v38 = vadd.f32 -1.0, %v622_v28  ;;  %v313_v41 = vmul.f32 10.0, %v570_v32 }
 0x123   :  { %v308_v33 = vmul.f32 10.0, %v565_v25  ;;  %v563_v43 = vadd.f32 -1.0, %v229_v24  ;;  %v328_v44 = vadd.f32 %v822_v30, %v305_v35  ;;  %v571_v45 = vadd.f32 -1.0, %v261_v36 }
 0x124   :  { %v617_v31 = vpop.f32.mrf.mxu0  ;;  %v625_v40 = vpop.f32.mrf.mxu1  ;;  %v380_v46 = vmul.f32 1.442695, %v338_v34  ;;  %v316_v47 = vmul.f32 10.0, %v573_v38  ;;  %v364_v48 = vmul.f32 1.442695, %v330_v37  ;;  %v336_v51 = vadd.f32 %v822_v30, %v313_v41 }
 0x125   :  { %v331_v42 = vadd.f32 %v822_v30, %v308_v33  ;;  %v306_v53 = vmul.f32 10.0, %v563_v43  ;;  %v360_v54 = vmul.f32 1.442695, %v328_v44  ;;  %v314_v55 = vmul.f32 10.0, %v571_v45 }
 0x126   :  { %v242_v39 = vpop.f32.mrf.mxu0  ;;  %v274_v50 = vpop.f32.mrf.mxu1  ;;  %v568_v56 = vadd.f32 -1.0, %v617_v31  ;;  %664 = vpow2.f32 %v380_v46  ;;  %v339_v57 = vadd.f32 %v822_v30, %v316_v47  ;;  %v376_v61 = vmul.f32 1.442695, %v336_v51  ;;  %v346_v51 = vld [vmem:[#allocation2 + $0x10] sm:$0xff] }
 0x127   :  { %v366_v52 = vmul.f32 1.442695, %v331_v42  ;;  %666 = vpow2.f32 %v364_v48  ;;  %v329_v62 = vadd.f32 %v822_v30, %v306_v53  ;;  %v337_v63 = vadd.f32 %v822_v30, %v314_v55 }
 0x128   :  { %v618_v49 = vpop.f32.mrf.mxu0  ;;  %v626_v60 = vpop.f32.mrf.mxu1  ;;  %v311_v0 = vmul.f32 10.0, %v568_v56  ;;  %v566_v1 = vadd.f32 -1.0, %v242_v39  ;;  %v382_v2 = vmul.f32 1.442695, %v339_v57  ;;  %v574_v10 = vadd.f32 -1.0, %v274_v50  ;;  %v354_v50 = vld [vmem:[#allocation2 + $0x50] sm:$0xff] }
 0x129   :  { %v569_v58 = vadd.f32 -1.0, %v618_v49  ;;  %668 = vpow2.f32 %v366_v52  ;;  %v362_v6 = vmul.f32 1.442695, %v329_v62  ;;  %v378_v7 = vmul.f32 1.442695, %v337_v63  ;;  %v344_v56 = vld [vmem:[#allocation2] sm:$0xff] }
 0x12a   :  { %v245_v59 = vpop.f32.mrf.mxu0  ;;  %670 = vpow2.f32 %v360_v54  ;;  %v277_v5 = vpop.f32.mrf.mxu1  ;;  %v334_v8 = vadd.f32 %v822_v30, %v311_v0  ;;  %v309_v9 = vmul.f32 10.0, %v566_v1  ;;  %v576_v14 = vadd.f32 -1.0, %v625_v40  ;;  %v347_v57 = vld [vmem:[#allocation2 + $0x18] sm:$0xff]  ;;  %v352_v62 = vld [vmem:[#allocation2 + $0x40] sm:$0xff] }
 0x12b   :  { %v312_v3 = vmul.f32 10.0, %v569_v58  ;;  %v567_v4 = vadd.f32 -1.0, %v245_v59  ;;  %672 = vpow2.f32 %v376_v61  ;;  %v575_v13 = vadd.f32 -1.0, %v277_v5  ;;  %v355_v63 = vld [vmem:[#allocation2 + $0x58] sm:$0xff]  ;;  %v345_v5 = vld [vmem:[#allocation2 + $0x8] sm:$0xff] }
 0x12c   :  { %674 = vpow2.f32 %v382_v2  ;;  %v372_v15 = vmul.f32 1.442695, %v334_v8  ;;  %v332_v16 = vadd.f32 %v822_v30, %v309_v9  ;;  %v317_v17 = vmul.f32 10.0, %v574_v10 }
 0x12d   :  { %v335_v11 = vadd.f32 %v822_v30, %v312_v3  ;;  %v310_v12 = vmul.f32 10.0, %v567_v4  ;;  %676 = vpow2.f32 %v362_v6  ;;  %v577_v21 = vadd.f32 -1.0, %v626_v60 }
 0x12e   :  { %678 = vpow2.f32 %v378_v7  ;;  %v318_v22 = vmul.f32 10.0, %v575_v13  ;;  %v368_v25 = vmul.f32 1.442695, %v332_v16  ;;  %v319_v26 = vmul.f32 10.0, %v576_v14  ;;  %v353_v7 = vld [vmem:[#allocation2 + $0x48] sm:$0xff]  ;;  %v350_v13 = vld [vmem:[#allocation2 + $0x30] sm:$0xff] }
 0x12f   :  { %v374_v19 = vmul.f32 1.442695, %v335_v11  ;;  %v333_v20 = vadd.f32 %v822_v30, %v310_v12  ;;  %680 = vpow2.f32 %v372_v15  ;;  %v340_v27 = vadd.f32 %v822_v30, %v317_v17  ;;  %v351_v15 = vld [vmem:[#allocation2 + $0x38] sm:$0xff] }
 0x130   :  { %v320_v31 = vmul.f32 10.0, %v577_v21  ;;  %v341_v32 = vadd.f32 %v822_v30, %v318_v22  ;;  %v342_v34 = vadd.f32 %v822_v30, %v319_v26  ;;  %v348_v21 = vld [vmem:[#allocation2 + $0x20] sm:$0xff] }
 0x131   :  { %682 = vpow2.f32 %v374_v19  ;;  %v370_v29 = vmul.f32 1.442695, %v333_v20  ;;  %v384_v35 = vmul.f32 1.442695, %v340_v27 }
 0x132   :  { %684 = vpow2.f32 %v368_v25  ;;  %v343_v36 = vadd.f32 %v822_v30, %v320_v31  ;;  %v386_v37 = vmul.f32 1.442695, %v341_v32  ;;  %v388_v40 = vmul.f32 1.442695, %v342_v34  ;;  %v357_v32 = vld [vmem:[#allocation2 + $0x68] sm:$0xff] }
 0x133   :  { %v665_v18 = vpop.eup %664  ;;  %686 = vpow2.f32 %v370_v29  ;;  %v356_v29 = vld [vmem:[#allocation2 + $0x60] sm:$0xff] }
 0x134   :  { %v667_v23 = vpop.eup %666  ;;  %412 = vadd.xlane.f32.xlu0 %v665_v18  ;;  %688 = vpow2.f32 %v384_v35  ;;  %v390_v42 = vmul.f32 1.442695, %v343_v36 }
 0x135   :  { %396 = vadd.xlane.f32.xlu1 %v667_v23  ;;  %690 = vpow2.f32 %v386_v37  ;;  %v349_v23 = vld [vmem:[#allocation2 + $0x28] sm:$0xff] }
 0x136   :  { %v669_v24 = vpop.eup %668  ;;  %692 = vpow2.f32 %v388_v40 }
 0x137   :  { %v671_v28 = vpop.eup %670  ;;  %694 = vpow2.f32 %v390_v42  ;;  %v358_v42 = vld [vmem:[#allocation2 + $0x70] sm:$0xff] }
 0x138   :  { %392 = vadd.xlane.f32.xlu0 %v671_v28  ;;  %v673_v33 = vpop.eup %672 }
 0x139   :  { %398 = vadd.xlane.f32.xlu1 %v669_v24  ;;  %v675_v38 = vpop.eup %674 }
 0x13a   :  { %v677_v39 = vpop.eup %676 }
 0x13b   :  { %v679_v41 = vpop.eup %678 }
 0x13c   :  { %408 = vadd.xlane.f32.xlu0 %v673_v33  ;;  %v681_v43 = vpop.eup %680 }
 0x13d   :  { %414 = vadd.xlane.f32.xlu1 %v675_v38 }
 0x13e   :  { %v683_v44 = vpop.eup %682 }
 0x13f   :  { %v685_v45 = vpop.eup %684 }
 0x140   :  { %394 = vadd.xlane.f32.xlu0 %v677_v39  ;;  %v687_v30 = vpop.eup %686 }
 0x141   :  { %410 = vadd.xlane.f32.xlu1 %v679_v41  ;;  %v689_v46 = vpop.eup %688 }
 0x142   :  { %v691_v47 = vpop.eup %690 }
 0x143   :  { %v693_v48 = vpop.eup %692 }
 0x144   :  { %404 = vadd.xlane.f32.xlu0 %v681_v43  ;;  %v695_v49 = vpop.eup %694 }
 0x145   :  { %406 = vadd.xlane.f32.xlu1 %v683_v44 }
 0x148   :  { %400 = vadd.xlane.f32.xlu0 %v685_v45  ;;  %v359_v45 = vld [vmem:[#allocation2 + $0x78] sm:$0xff] }
 0x149   :  { %402 = vadd.xlane.f32.xlu1 %v687_v30 }
 0x14c   :  { %416 = vadd.xlane.f32.xlu0 %v689_v46 }
 0x14d   :  { %418 = vadd.xlane.f32.xlu1 %v691_v47 }
 0x150   :  { %420 = vadd.xlane.f32.xlu0 %v693_v48 }
 0x151   :  { %422 = vadd.xlane.f32.xlu1 %v695_v49 }
 0x1bd   :  { %v413_v52 = vpop.xlane.xlu0 %412 }
 0x1be   :  { %v434_v53 = vadd.f32 %v413_v52, %v354_v50  ;;  %v397_v54 = vpop.xlane.xlu1 %396 }
 0x1bf   :  { %v426_v55 = vadd.f32 %v397_v54, %v346_v51 }
 0x1c0   :  { %451 = vst.msk [vmem:[#allocation2 + $0x50] sm:$0xff] %vm47_vm0, %v434_v53 }
 0x1c1   :  { %443 = vst.msk [vmem:[#allocation2 + $0x10] sm:$0xff] %vm47_vm0, %v426_v55  ;;  %v393_v58 = vpop.xlane.xlu0 %392 }
 0x1c2   :  { %v424_v59 = vadd.f32 %v393_v58, %v344_v56  ;;  %v399_v60 = vpop.xlane.xlu1 %398 }
 0x1c3   :  { %v427_v61 = vadd.f32 %v399_v60, %v347_v57 }
 0x1c4   :  { %441 = vst.msk [vmem:[#allocation2] sm:$0xff] %vm47_vm0, %v424_v59 }
 0x1c5   :  { %444 = vst.msk [vmem:[#allocation2 + $0x18] sm:$0xff] %vm47_vm0, %v427_v61  ;;  %v409_v0 = vpop.xlane.xlu0 %408 }
 0x1c6   :  { %v432_v1 = vadd.f32 %v409_v0, %v352_v62  ;;  %v415_v2 = vpop.xlane.xlu1 %414 }
 0x1c7   :  { %v470_v3 = vld [vmem:[#allocation2 + $0x50] sm:$0xff]  ;;  %v435_v4 = vadd.f32 %v415_v2, %v355_v63 }
 0x1c8   :  { %696 = vlog2.f32 %v470_v3  ;;  %v462_v6 = vld [vmem:[#allocation2 + $0x10] sm:$0xff]  ;;  %449 = vst.msk [vmem:[#allocation2 + $0x40] sm:$0xff] %vm47_vm0, %v432_v1 }
 0x1c9   :  { %698 = vlog2.f32 %v462_v6  ;;  %452 = vst.msk [vmem:[#allocation2 + $0x58] sm:$0xff] %vm47_vm0, %v435_v4  ;;  %v395_v8 = vpop.xlane.xlu0 %394 }
 0x1ca   :  { %v411_v9 = vpop.xlane.xlu1 %410  ;;  %v425_v10 = vadd.f32 %v395_v8, %v345_v5 }
 0x1cb   :  { %v460_v11 = vld [vmem:[#allocation2] sm:$0xff]  ;;  %v433_v12 = vadd.f32 %v411_v9, %v353_v7 }
 0x1cc   :  { %700 = vlog2.f32 %v460_v11  ;;  %v463_v14 = vld [vmem:[#allocation2 + $0x18] sm:$0xff]  ;;  %442 = vst.msk [vmem:[#allocation2 + $0x8] sm:$0xff] %vm47_vm0, %v425_v10 }
 0x1cd   :  { %702 = vlog2.f32 %v463_v14  ;;  %450 = vst.msk [vmem:[#allocation2 + $0x48] sm:$0xff] %vm47_vm0, %v433_v12  ;;  %v405_v16 = vpop.xlane.xlu0 %404 }
 0x1ce   :  { %v430_v17 = vadd.f32 %v405_v16, %v350_v13  ;;  %v407_v18 = vpop.xlane.xlu1 %406 }
 0x1cf   :  { %v468_v19 = vld [vmem:[#allocation2 + $0x40] sm:$0xff]  ;;  %v431_v20 = vadd.f32 %v407_v18, %v351_v15 }
 0x1d0   :  { %704 = vlog2.f32 %v468_v19  ;;  %v471_v22 = vld [vmem:[#allocation2 + $0x58] sm:$0xff]  ;;  %447 = vst.msk [vmem:[#allocation2 + $0x30] sm:$0xff] %vm47_vm0, %v430_v17 }
 0x1d1   :  { %706 = vlog2.f32 %v471_v22  ;;  %448 = vst.msk [vmem:[#allocation2 + $0x38] sm:$0xff] %vm47_vm0, %v431_v20  ;;  %v401_v24 = vpop.xlane.xlu0 %400 }
 0x1d2   :  { %v428_v25 = vadd.f32 %v401_v24, %v348_v21  ;;  %v403_v26 = vpop.xlane.xlu1 %402 }
 0x1d3   :  { %v461_v27 = vld [vmem:[#allocation2 + $0x8] sm:$0xff]  ;;  %v429_v28 = vadd.f32 %v403_v26, %v349_v23 }
 0x1d4   :  { %v469_v31 = vld [vmem:[#allocation2 + $0x48] sm:$0xff]  ;;  %708 = vlog2.f32 %v461_v27  ;;  %445 = vst.msk [vmem:[#allocation2 + $0x20] sm:$0xff] %vm47_vm0, %v428_v25 }
 0x1d5   :  { %v697_v33 = vpop.eup %696  ;;  %710 = vlog2.f32 %v469_v31  ;;  %446 = vst.msk [vmem:[#allocation2 + $0x28] sm:$0xff] %vm47_vm0, %v429_v28  ;;  %v417_v34 = vpop.xlane.xlu0 %416 }
 0x1d6   :  { %v699_v35 = vpop.eup %698  ;;  %v497_v36 = vmul.f32 0.6931472, %v697_v33  ;;  %v436_v37 = vadd.f32 %v417_v34, %v356_v29  ;;  %v419_v38 = vpop.xlane.xlu1 %418 }
 0x1d7   :  { %v481_v39 = vmul.f32 0.6931472, %v699_v35  ;;  %v466_v40 = vld [vmem:[#allocation2 + $0x30] sm:$0xff]  ;;  %v437_v41 = vadd.f32 %v419_v38, %v357_v32 }
 0x1d8   :  { %v518_v43 = vadd.f32 10.0, %v497_v36  ;;  %712 = vlog2.f32 %v466_v40  ;;  %v467_v44 = vld [vmem:[#allocation2 + $0x38] sm:$0xff]  ;;  %453 = vst.msk [vmem:[#allocation2 + $0x60] sm:$0xff] %vm47_vm0, %v436_v37 }
 0x1d9   :  { %v701_v30 = vpop.eup %700  ;;  %v510_v46 = vadd.f32 10.0, %v481_v39  ;;  %714 = vlog2.f32 %v467_v44  ;;  %454 = vst.msk [vmem:[#allocation2 + $0x68] sm:$0xff] %vm47_vm0, %v437_v41  ;;  %v421_v47 = vpop.xlane.xlu0 %420 }
 0x1da   :  { %v703_v48 = vpop.eup %702  ;;  %534 = vst.msk [vmem:[%s923_s3 + $0x50] sm:$0xff] %vm47_vm0, %v518_v43  ;;  %v477_v49 = vmul.f32 0.6931472, %v701_v30  ;;  %v438_v50 = vadd.f32 %v421_v47, %v358_v42  ;;  %v423_v51 = vpop.xlane.xlu1 %422 }
 0x1db   :  { %526 = vst.msk [vmem:[%s923_s3 + $0x10] sm:$0xff] %vm47_vm0, %v510_v46  ;;  %v483_v52 = vmul.f32 0.6931472, %v703_v48  ;;  %v464_v53 = vld [vmem:[#allocation2 + $0x20] sm:$0xff]  ;;  %v439_v54 = vadd.f32 %v423_v51, %v359_v45 }
 0x1dc   :  { %v508_v55 = vadd.f32 10.0, %v477_v49  ;;  %716 = vlog2.f32 %v464_v53  ;;  %v465_v56 = vld [vmem:[#allocation2 + $0x28] sm:$0xff]  ;;  %455 = vst.msk [vmem:[#allocation2 + $0x70] sm:$0xff] %vm47_vm0, %v438_v50 }
 0x1dd   :  { %v705_v57 = vpop.eup %704  ;;  %v511_v58 = vadd.f32 10.0, %v483_v52  ;;  %718 = vlog2.f32 %v465_v56  ;;  %456 = vst.msk [vmem:[#allocation2 + $0x78] sm:$0xff] %vm47_vm0, %v439_v54 }
 0x1de   :  { %v707_v59 = vpop.eup %706  ;;  %524 = vst.msk [vmem:[%s923_s3] sm:$0xff] %vm47_vm0, %v508_v55  ;;  %v493_v60 = vmul.f32 0.6931472, %v705_v57 }
 0x1df   :  { %527 = vst.msk [vmem:[%s923_s3 + $0x18] sm:$0xff] %vm47_vm0, %v511_v58  ;;  %v499_v61 = vmul.f32 0.6931472, %v707_v59  ;;  %v472_v62 = vld [vmem:[#allocation2 + $0x60] sm:$0xff] }
 0x1e0   :  { %v516_v63 = vadd.f32 10.0, %v493_v60  ;;  %720 = vlog2.f32 %v472_v62  ;;  %v473_v0 = vld [vmem:[#allocation2 + $0x68] sm:$0xff] }
 0x1e1   :  { %v709_v1 = vpop.eup %708  ;;  %v519_v2 = vadd.f32 10.0, %v499_v61  ;;  %722 = vlog2.f32 %v473_v0 }
 0x1e2   :  { %v711_v3 = vpop.eup %710  ;;  %532 = vst.msk [vmem:[%s923_s3 + $0x40] sm:$0xff] %vm47_vm0, %v516_v63  ;;  %v479_v4 = vmul.f32 0.6931472, %v709_v1 }
 0x1e3   :  { %535 = vst.msk [vmem:[%s923_s3 + $0x58] sm:$0xff] %vm47_vm0, %v519_v2  ;;  %v495_v5 = vmul.f32 0.6931472, %v711_v3  ;;  %v474_v6 = vld [vmem:[#allocation2 + $0x70] sm:$0xff] }
 0x1e4   :  { %v509_v7 = vadd.f32 10.0, %v479_v4  ;;  %724 = vlog2.f32 %v474_v6  ;;  %v475_v8 = vld [vmem:[#allocation2 + $0x78] sm:$0xff] }
 0x1e5   :  { %v713_v9 = vpop.eup %712  ;;  %v517_v10 = vadd.f32 10.0, %v495_v5  ;;  %726 = vlog2.f32 %v475_v8 }
 0x1e6   :  { %v715_v11 = vpop.eup %714  ;;  %525 = vst.msk [vmem:[%s923_s3 + $0x8] sm:$0xff] %vm47_vm0, %v509_v7  ;;  %v489_v12 = vmul.f32 0.6931472, %v713_v9 }
 0x1e7   :  { %533 = vst.msk [vmem:[%s923_s3 + $0x48] sm:$0xff] %vm47_vm0, %v517_v10  ;;  %v491_v13 = vmul.f32 0.6931472, %v715_v11 }
 0x1e8   :  { %v514_v14 = vadd.f32 10.0, %v489_v12 }
 0x1e9   :  { %v717_v15 = vpop.eup %716  ;;  %v515_v16 = vadd.f32 10.0, %v491_v13 }
 0x1ea   :  { %v719_v17 = vpop.eup %718  ;;  %530 = vst.msk [vmem:[%s923_s3 + $0x30] sm:$0xff] %vm47_vm0, %v514_v14  ;;  %v485_v18 = vmul.f32 0.6931472, %v717_v15 }
 0x1eb   :  { %531 = vst.msk [vmem:[%s923_s3 + $0x38] sm:$0xff] %vm47_vm0, %v515_v16  ;;  %v487_v19 = vmul.f32 0.6931472, %v719_v17 }
 0x1ec   :  { %v512_v20 = vadd.f32 10.0, %v485_v18 }
 0x1ed   :  { %v721_v21 = vpop.eup %720  ;;  %v513_v22 = vadd.f32 10.0, %v487_v19 }
 0x1ee   :  { %v723_v23 = vpop.eup %722  ;;  %528 = vst.msk [vmem:[%s923_s3 + $0x20] sm:$0xff] %vm47_vm0, %v512_v20  ;;  %v501_v24 = vmul.f32 0.6931472, %v721_v21 }
 0x1ef   :  { %529 = vst.msk [vmem:[%s923_s3 + $0x28] sm:$0xff] %vm47_vm0, %v513_v22  ;;  %v503_v25 = vmul.f32 0.6931472, %v723_v23 }
 0x1f0   :  { %v520_v26 = vadd.f32 10.0, %v501_v24 }
 0x1f1   :  { %v725_v27 = vpop.eup %724  ;;  %v521_v28 = vadd.f32 10.0, %v503_v25 }
 0x1f2   :  { %v727_v29 = vpop.eup %726  ;;  %536 = vst.msk [vmem:[%s923_s3 + $0x60] sm:$0xff] %vm47_vm0, %v520_v26  ;;  %v505_v31 = vmul.f32 0.6931472, %v725_v27 }
 0x1f3   :  { %537 = vst.msk [vmem:[%s923_s3 + $0x68] sm:$0xff] %vm47_vm0, %v521_v28  ;;  %v507_v32 = vmul.f32 0.6931472, %v727_v29 }
 0x1f4   :  { %v522_v33 = vadd.f32 10.0, %v505_v31 }
 0x1f5   :  { %v523_v34 = vadd.f32 10.0, %v507_v32 }
 0x1f6   :  { %538 = vst.msk [vmem:[%s923_s3 + $0x70] sm:$0xff] %vm47_vm0, %v522_v33 }
 0x1f7   :  { %539 = vst.msk [vmem:[%s923_s3 + $0x78] sm:$0xff] %vm47_vm0, %v523_v34 }
 0x1f8   :  { %544 = vsyncpa [#allocation4], 1 }
 0x1f9   :  { %545 = vsyncpa [#allocation6], 1 }

</bundles_post_ra>
